<compile_context>
chip_gen: v6e
topology: v6e:2x2x1
jax: 0.10.0
libtpu: 0.0.40
codegen_flags: <defaults>
</compile_context>

<pallas_src>
import functools

import jax
import jax.numpy as jnp
from jax.experimental import pallas as pl
from jax.experimental.pallas import tpu as pltpu

BN_EPS = 1e-5
LANE = 128  # padded head width (classes) and padded layer-4 channel count

# (cin, cout, kernel, stride, pad) for conv1..conv4 of CNNModel.
CONV_CFGS = [
    (1, 8, 5, 2, 2),
    (8, 16, 3, 2, 1),
    (16, 32, 3, 2, 1),
    (32, 64, 3, 2, 1),
]


def _conv_out_hw(h, w, k, stride, pad):
    return (h + 2 * pad - k) // stride + 1, (w + 2 * pad - k) // stride + 1


# ------------------------------ Pallas kernel --------------------------------

def _fused_cnn_kernel(x_ref,
                      d1_ref, d2_ref, d3_ref, d4_ref,
                      b1_ref, b2_ref, b3_ref, b4_ref,
                      wh_ref, bh_ref, o_ref):
    """Entire CNNModel forward on one batch-row tile.

    x_ref : (TN, H*W)       bf16  flattened input image (Cin = 1)
    dX_ref: (Fin_l, Fout_l) bf16  dense unrolled conv-l weights, BN_{l-1} scale folded in
    bX_ref: (1, Fout_l)     f32   conv-l bias row + BN_{l-1} shift pushed through conv-l
    wh_ref: (128, 128)      bf16  avg-pool + FC + BN4, zero-padded lane-dense
    bh_ref: (1, 128)        f32   head bias (BN4 shift folded in), zero-padded
    o_ref : (TN, 128)       f32   padded logits (first num_classes columns valid)
    """

    def block(h, d_ref, b_ref):
        acc = jnp.dot(h, d_ref[...], preferred_element_type=jnp.float32)
        acc = jnp.maximum(acc + b_ref[...], 0.0)   # bias + ReLU (BN folded forward)
        return acc.astype(jnp.bfloat16)

    h = x_ref[...]
    h = block(h, d1_ref, b1_ref)
    h = block(h, d2_ref, b2_ref)
    h = block(h, d3_ref, b3_ref)
    h = block(h, d4_ref, b4_ref)

    # AdaptiveAvgPool2d(1) + Linear (+ BN4), all folded into wh/bh. Lane-dense store.
    o_ref[...] = (jnp.dot(h, wh_ref[...], preferred_element_type=jnp.float32)
                  + bh_ref[...])


# --------------------------- weight preprocessing -----------------------------

def _unroll_conv(w_torch, H, W, stride, pad):
    """Fold zero-padded strided conv into a dense (H*W*Cin, Ho*Wo*Cout) matrix.

    w_torch has PyTorch layout (Cout, Cin, kh, kw).  Input/output vectors are
    flattened row-major over (h, w, c) / (ho, wo, co) (NHWC, channel fastest).
    """
    cout, cin, kh, kw = w_torch.shape
    Ho, Wo = _conv_out_hw(H, W, kh, stride, pad)
    hi, wi = jnp.arange(H), jnp.arange(W)
    ho, wo = jnp.arange(Ho), jnp.arange(Wo)
    ki, kj = jnp.arange(kh), jnp.arange(kw)
    # Rh[i, h, ho] = 1  iff  h == stride*ho + i - pad  (out-of-range == zero pad)
    Rh = (hi[None, :, None] ==
          (stride * ho[None, None, :] + ki[:, None, None] - pad)).astype(jnp.float32)
    Rw = (wi[None, :, None] ==
          (stride * wo[None, None, :] + kj[:, None, None] - pad)).astype(jnp.float32)
    D = jnp.einsum("ihp,jwq,ocij->hwcpqo", Rh, Rw, w_torch.astype(jnp.float32))
    return D.reshape(H * W * cin, Ho * Wo * cout), Ho, Wo


def prepare_params(raw, H, W):
    """One-time, plain-JAX folding of PyTorch-layout weights into kernel operands.

    BatchNorm (eval) sits AFTER each ReLU, so it is folded exactly into the
    *following* linear op:  (r*s + t) @ D  ==  r @ (diag(s) D)  +  t @ D.
    BN4 folds into the avg-pool+FC head the same way.
    """
    h, w = H, W
    d_raw, conv_bias, scale_rows, shift_rows = [], [], [], []
    for (cin, cout, k, stride, pad), layer in zip(CONV_CFGS, raw["convs"]):
        w_t, b, gamma, beta, mu, var = layer              # PyTorch layouts
        D, h, w = _unroll_conv(w_t, h, w, stride, pad)
        d_raw.append(D)
        rep = h * w                                       # channel-fastest flat layout
        conv_bias.append(jnp.tile(b, rep).astype(jnp.float32))
        scale = gamma / jnp.sqrt(var + BN_EPS)            # BN(eval): y = x*scale + shift
        shift = beta - mu * scale
        scale_rows.append(jnp.tile(scale, rep).astype(jnp.float32))
        shift_rows.append(jnp.tile(shift, rep).astype(jnp.float32))

    d_mats, bias_rows = [], []
    for l in range(len(CONV_CFGS)):
        D, b_row = d_raw[l], conv_bias[l]
        if l > 0:                                         # fold BN_{l-1} into layer l
            b_row = b_row + shift_rows[l - 1] @ D         # shift through UNSCALED D
            D = scale_rows[l - 1][:, None] * D            # scale premultiplies rows
        d_mats.append(D)
        bias_rows.append(b_row)

    # Head: AdaptiveAvgPool2d(1) + Linear, with BN4 folded in (pooling is linear).
    w_fc, b_fc = raw["fc"]                                # (num_classes, 64), (num_classes,)
    num_classes = w_fc.shape[0]
    c4 = CONV_CFGS[-1][1]
    pool = jnp.tile(jnp.eye(c4, dtype=jnp.float32), (h * w, 1)) / float(h * w)
    w_base = pool @ w_fc.T.astype(jnp.float32)            # (F4, num_classes)
    b_head = shift_rows[-1] @ w_base + b_fc.astype(jnp.float32)
    w_head = scale_rows[-1][:, None] * w_base

    # Lane-dense padding: layer-4 channels 64 -> 128, classes -> 128 (zeros).
    assert num_classes <= LANE
    pad_c = LANE - d_mats[-1].shape[1]
    d_mats[-1] = jnp.pad(d_mats[-1], ((0, 0), (0, pad_c)))
    bias_rows[-1] = jnp.pad(bias_rows[-1], (0, pad_c))
    w_head = jnp.pad(w_head, ((0, pad_c), (0, LANE - num_classes)))
    b_head = jnp.pad(b_head, (0, LANE - num_classes))

    return {
        "D": [d.astype(jnp.bfloat16) for d in d_mats],
        "bias": [b.reshape(1, -1).astype(jnp.float32) for b in bias_rows],
        "w_head": w_head.astype(jnp.bfloat16),
        "b_head": b_head.reshape(1, -1).astype(jnp.float32),
    }


# ---------------------------------- forward -----------------------------------

def _batch_tile(N):
    """Batch-row tile: up to 512 rows/step (fills the 256-wide v6e/v7x MXU and
    amortizes per-step overhead) while keeping >= 2 grid steps when N allows so
    the "parallel" grid axis shards across v7x's two TensorCores."""
    if N < 16:
        return N                                  # one step; block dim == full array dim
    tn = (((N + 1) // 2 + 7) // 8) * 8            # >= 2 steps, multiple of 8 sublanes
    return min(tn, 512)


def cnn_forward(prep, x, *, num_classes):
    """x: (N, H, W) float -> logits (N, num_classes).  Mirrors CNNModel.forward."""
    N, H, W = x.shape
    x_flat = x.reshape(N, H * W).astype(jnp.bfloat16)

    d1, d2, d3, d4 = prep["D"]
    b1, b2, b3, b4 = prep["bias"]
    w_head, b_head = prep["w_head"], prep["b_head"]
    padded_classes = w_head.shape[-1]

    tn = _batch_tile(N)
    grid = (pl.cdiv(N, tn),)

    # Constant weights: index_map never changes -> single-buffer (no wasted VMEM).
    wspec = lambda a: pl.BlockSpec(a.shape, lambda i: (0, 0),
                                   pipeline_mode=pl.Buffered(1))

    logits = pl.pallas_call(
        _fused_cnn_kernel,
        out_shape=jax.ShapeDtypeStruct((N, padded_classes), jnp.float32),
        grid=grid,
        in_specs=[
            pl.BlockSpec((tn, H * W), lambda i: (i, 0)),
            wspec(d1), wspec(d2), wspec(d3), wspec(d4),
            wspec(b1), wspec(b2), wspec(b3), wspec(b4),
            wspec(w_head), wspec(b_head),
        ],
        out_specs=pl.BlockSpec((tn, padded_classes), lambda i: (i, 0)),
        compiler_params=pltpu.CompilerParams(
            dimension_semantics=("parallel",),    # batch tiles shard across v7x's 2 TCs
            vmem_limit_bytes=32 * 1024 * 1024,
        ),
    )(x_flat, d1, d2, d3, d4, b1, b2, b3, b4, w_head, b_head)

    # Slice off the lane-padding (classes 10 -> 128) in the wrapper.
    return logits[:, :num_classes]


# -------------------------------- parameters ----------------------------------

def init_params(key, num_classes):
    """Random parameters in native PyTorch layouts."""
    params = {"convs": []}
    for cin, cout, k, _, _ in CONV_CFGS:
        key, kw_, kb_, kg_, kbt_, km_, kv_ = jax.random.split(key, 7)
        w_t = 0.1 * jax.random.normal(kw_, (cout, cin, k, k), jnp.float32)
        b = 0.1 * jax.random.normal(kb_, (cout,), jnp.float32)
        gamma = 1.0 + 0.1 * jax.random.normal(kg_, (cout,), jnp.float32)
        beta = 0.1 * jax.random.normal(kbt_, (cout,), jnp.float32)
        mu = 0.1 * jax.random.normal(km_, (cout,), jnp.float32)
        var = 1.0 + 0.1 * jnp.abs(jax.random.normal(kv_, (cout,), jnp.float32))
        params["convs"].append((w_t, b, gamma, beta, mu, var))
    key, kfw, kfb = jax.random.split(key, 3)
    w_fc = 0.1 * jax.random.normal(kfw, (num_classes, CONV_CFGS[-1][1]), jnp.float32)
    b_fc = 0.1 * jax.random.normal(kfb, (num_classes,), jnp.float32)
    params["fc"] = (w_fc, b_fc)
    return params


# ----------------------------------- main --------------------------------------

if __name__ == "__main__":
    NUM_CLASSES = 10
    key = jax.random.PRNGKey(0)
    kx, kp = jax.random.split(key)
    # CNNModel.forward adds the channel axis itself, so the input is (N, H, W).
    x = jax.random.normal(kx, (2, 16, 16), jnp.float32)
    raw = init_params(kp, NUM_CLASSES)
    prep = prepare_params(raw, 16, 16)            # one-time weight folding (plain JAX)

    fwd = jax.jit(functools.partial(cnn_forward, num_classes=NUM_CLASSES))
    out = jax.block_until_ready(fwd(prep, x))
    assert out.shape == (2, NUM_CLASSES), out.shape
    assert out.dtype == jnp.float32
    assert bool(jnp.all(jnp.isfinite(out)))
    print("KERNEL_OK")
</pallas_src>

<mosaic_0001>
module attributes {stable_mosaic.version = 11 : i64} {
  func.func @_fused_cnn_kernel(%arg0: i32, %arg1: memref<2x256xbf16, #tpu.memory_space<vmem>>, %arg2: memref<256x512xbf16, #tpu.memory_space<vmem>>, %arg3: memref<512x256xbf16, #tpu.memory_space<vmem>>, %arg4: memref<256x128xbf16, #tpu.memory_space<vmem>>, %arg5: memref<128x128xbf16, #tpu.memory_space<vmem>>, %arg6: memref<1x512xf32, #tpu.memory_space<vmem>>, %arg7: memref<1x256xf32, #tpu.memory_space<vmem>>, %arg8: memref<1x128xf32, #tpu.memory_space<vmem>>, %arg9: memref<1x128xf32, #tpu.memory_space<vmem>>, %arg10: memref<128x128xbf16, #tpu.memory_space<vmem>>, %arg11: memref<1x128xf32, #tpu.memory_space<vmem>>, %arg12: memref<2x128xf32, #tpu.memory_space<vmem>>) attributes {dimension_semantics = [#tpu.dimension_semantics<parallel>], iteration_bounds = array<i64: 1>, scalar_prefetch = 0 : i64, scratch_operands = 0 : i64, tpu.core_type = #tpu.core_type<tc>, window_params = [{transform_indices = @transform_0, window_bounds = array<i64: 2, 256>}, {pipeline_mode = #tpu.pipeline_mode<synchronous>, transform_indices = @transform_1, window_bounds = array<i64: 256, 512>}, {pipeline_mode = #tpu.pipeline_mode<synchronous>, transform_indices = @transform_2, window_bounds = array<i64: 512, 256>}, {pipeline_mode = #tpu.pipeline_mode<synchronous>, transform_indices = @transform_3, window_bounds = array<i64: 256, 128>}, {pipeline_mode = #tpu.pipeline_mode<synchronous>, transform_indices = @transform_4, window_bounds = array<i64: 128, 128>}, {pipeline_mode = #tpu.pipeline_mode<synchronous>, transform_indices = @transform_5, window_bounds = array<i64: 1, 512>}, {pipeline_mode = #tpu.pipeline_mode<synchronous>, transform_indices = @transform_6, window_bounds = array<i64: 1, 256>}, {pipeline_mode = #tpu.pipeline_mode<synchronous>, transform_indices = @transform_7, window_bounds = array<i64: 1, 128>}, {pipeline_mode = #tpu.pipeline_mode<synchronous>, transform_indices = @transform_8, window_bounds = array<i64: 1, 128>}, {pipeline_mode = #tpu.pipeline_mode<synchronous>, transform_indices = @transform_9, window_bounds = array<i64: 128, 128>}, {pipeline_mode = #tpu.pipeline_mode<synchronous>, transform_indices = @transform_10, window_bounds = array<i64: 1, 128>}, {transform_indices = @transform_11, window_bounds = array<i64: 2, 128>}]} {
    %c0 = arith.constant 0 : index
    %c0_0 = arith.constant 0 : index
    %0 = vector.load %arg1[%c0, %c0_0] : memref<2x256xbf16, #tpu.memory_space<vmem>>, vector<2x256xbf16>
    %c0_1 = arith.constant 0 : index
    %c0_2 = arith.constant 0 : index
    %1 = vector.load %arg2[%c0_1, %c0_2] : memref<256x512xbf16, #tpu.memory_space<vmem>>, vector<256x512xbf16>
    %cst = arith.constant dense<0.000000e+00> : vector<2x512xf32>
    %2 = tpu.matmul %0, %1, %cst {dimension_numbers = #tpu.dot_dimension_numbers<[1], [0], [0], [1], [0, 0, 1, 1], [], []>} : vector<2x256xbf16>, vector<256x512xbf16>, vector<2x512xf32> -> vector<2x512xf32>
    %c0_3 = arith.constant 0 : index
    %c0_4 = arith.constant 0 : index
    %3 = vector.load %arg6[%c0_3, %c0_4] : memref<1x512xf32, #tpu.memory_space<vmem>>, vector<1x512xf32>
    %4 = vector.broadcast %3 : vector<1x512xf32> to vector<2x512xf32>
    %5 = arith.addf %2, %4 : vector<2x512xf32>
    %cst_5 = arith.constant 0.000000e+00 : f32
    %6 = vector.broadcast %cst_5 : f32 to vector<2x512xf32>
    %7 = arith.maximumf %5, %6 : vector<2x512xf32>
    %8 = arith.truncf %7 : vector<2x512xf32> to vector<2x512xbf16>
    %c0_6 = arith.constant 0 : index
    %c0_7 = arith.constant 0 : index
    %9 = vector.load %arg3[%c0_6, %c0_7] : memref<512x256xbf16, #tpu.memory_space<vmem>>, vector<512x256xbf16>
    %cst_8 = arith.constant dense<0.000000e+00> : vector<2x256xf32>
    %10 = tpu.matmul %8, %9, %cst_8 {dimension_numbers = #tpu.dot_dimension_numbers<[1], [0], [0], [1], [0, 0, 1, 1], [], []>} : vector<2x512xbf16>, vector<512x256xbf16>, vector<2x256xf32> -> vector<2x256xf32>
    %c0_9 = arith.constant 0 : index
    %c0_10 = arith.constant 0 : index
    %11 = vector.load %arg7[%c0_9, %c0_10] : memref<1x256xf32, #tpu.memory_space<vmem>>, vector<1x256xf32>
    %12 = vector.broadcast %11 : vector<1x256xf32> to vector<2x256xf32>
    %13 = arith.addf %10, %12 : vector<2x256xf32>
    %cst_11 = arith.constant 0.000000e+00 : f32
    %14 = vector.broadcast %cst_11 : f32 to vector<2x256xf32>
    %15 = arith.maximumf %13, %14 : vector<2x256xf32>
    %16 = arith.truncf %15 : vector<2x256xf32> to vector<2x256xbf16>
    %c0_12 = arith.constant 0 : index
    %c0_13 = arith.constant 0 : index
    %17 = vector.load %arg4[%c0_12, %c0_13] : memref<256x128xbf16, #tpu.memory_space<vmem>>, vector<256x128xbf16>
    %cst_14 = arith.constant dense<0.000000e+00> : vector<2x128xf32>
    %18 = tpu.matmul %16, %17, %cst_14 {dimension_numbers = #tpu.dot_dimension_numbers<[1], [0], [0], [1], [0, 0, 1, 1], [], []>} : vector<2x256xbf16>, vector<256x128xbf16>, vector<2x128xf32> -> vector<2x128xf32>
    %c0_15 = arith.constant 0 : index
    %c0_16 = arith.constant 0 : index
    %19 = vector.load %arg8[%c0_15, %c0_16] : memref<1x128xf32, #tpu.memory_space<vmem>>, vector<1x128xf32>
    %20 = vector.broadcast %19 : vector<1x128xf32> to vector<2x128xf32>
    %21 = arith.addf %18, %20 : vector<2x128xf32>
    %cst_17 = arith.constant 0.000000e+00 : f32
    %22 = vector.broadcast %cst_17 : f32 to vector<2x128xf32>
    %23 = arith.maximumf %21, %22 : vector<2x128xf32>
    %24 = arith.truncf %23 : vector<2x128xf32> to vector<2x128xbf16>
    %c0_18 = arith.constant 0 : index
    %c0_19 = arith.constant 0 : index
    %25 = vector.load %arg5[%c0_18, %c0_19] : memref<128x128xbf16, #tpu.memory_space<vmem>>, vector<128x128xbf16>
    %cst_20 = arith.constant dense<0.000000e+00> : vector<2x128xf32>
    %26 = tpu.matmul %24, %25, %cst_20 {dimension_numbers = #tpu.dot_dimension_numbers<[1], [0], [0], [1], [0, 0, 1, 1], [], []>} : vector<2x128xbf16>, vector<128x128xbf16>, vector<2x128xf32> -> vector<2x128xf32>
    %c0_21 = arith.constant 0 : index
    %c0_22 = arith.constant 0 : index
    %27 = vector.load %arg9[%c0_21, %c0_22] : memref<1x128xf32, #tpu.memory_space<vmem>>, vector<1x128xf32>
    %28 = vector.broadcast %27 : vector<1x128xf32> to vector<2x128xf32>
    %29 = arith.addf %26, %28 : vector<2x128xf32>
    %cst_23 = arith.constant 0.000000e+00 : f32
    %30 = vector.broadcast %cst_23 : f32 to vector<2x128xf32>
    %31 = arith.maximumf %29, %30 : vector<2x128xf32>
    %32 = arith.truncf %31 : vector<2x128xf32> to vector<2x128xbf16>
    %c0_24 = arith.constant 0 : index
    %c0_25 = arith.constant 0 : index
    %33 = vector.load %arg10[%c0_24, %c0_25] : memref<128x128xbf16, #tpu.memory_space<vmem>>, vector<128x128xbf16>
    %cst_26 = arith.constant dense<0.000000e+00> : vector<2x128xf32>
    %34 = tpu.matmul %32, %33, %cst_26 {dimension_numbers = #tpu.dot_dimension_numbers<[1], [0], [0], [1], [0, 0, 1, 1], [], []>} : vector<2x128xbf16>, vector<128x128xbf16>, vector<2x128xf32> -> vector<2x128xf32>
    %c0_27 = arith.constant 0 : index
    %c0_28 = arith.constant 0 : index
    %35 = vector.load %arg11[%c0_27, %c0_28] : memref<1x128xf32, #tpu.memory_space<vmem>>, vector<1x128xf32>
    %36 = vector.broadcast %35 : vector<1x128xf32> to vector<2x128xf32>
    %37 = arith.addf %34, %36 : vector<2x128xf32>
    %c0_29 = arith.constant 0 : index
    %c0_30 = arith.constant 0 : index
    %38 = vector.load %arg12[%c0_29, %c0_30] : memref<2x128xf32, #tpu.memory_space<vmem>>, vector<2x128xf32>
    tpu.vector_store %arg12[%c0_29, %c0_30], %37 {strides = array<i32>} : memref<2x128xf32, #tpu.memory_space<vmem>>, vector<2x128xf32>,
    return
  }
  func.func @transform_0(%arg0: i32) -> (i32, i32) {
    %c0_i32 = arith.constant 0 : i32
    %c0_i32_0 = arith.constant 0 : i32
    return %arg0, %c0_i32 : i32, i32
  }
  func.func @transform_1(%arg0: i32) -> (i32, i32) {
    %c0_i32 = arith.constant 0 : i32
    %c0_i32_0 = arith.constant 0 : i32
    %c0_i32_1 = arith.constant 0 : i32
    return %c0_i32, %c0_i32_0 : i32, i32
  }
  func.func @transform_2(%arg0: i32) -> (i32, i32) {
    %c0_i32 = arith.constant 0 : i32
    %c0_i32_0 = arith.constant 0 : i32
    %c0_i32_1 = arith.constant 0 : i32
    return %c0_i32, %c0_i32_0 : i32, i32
  }
  func.func @transform_3(%arg0: i32) -> (i32, i32) {
    %c0_i32 = arith.constant 0 : i32
    %c0_i32_0 = arith.constant 0 : i32
    %c0_i32_1 = arith.constant 0 : i32
    return %c0_i32, %c0_i32_0 : i32, i32
  }
  func.func @transform_4(%arg0: i32) -> (i32, i32) {
    %c0_i32 = arith.constant 0 : i32
    %c0_i32_0 = arith.constant 0 : i32
    %c0_i32_1 = arith.constant 0 : i32
    return %c0_i32, %c0_i32_0 : i32, i32
  }
  func.func @transform_5(%arg0: i32) -> (i32, i32) {
    %c0_i32 = arith.constant 0 : i32
    %c0_i32_0 = arith.constant 0 : i32
    %c0_i32_1 = arith.constant 0 : i32
    return %c0_i32, %c0_i32_0 : i32, i32
  }
  func.func @transform_6(%arg0: i32) -> (i32, i32) {
    %c0_i32 = arith.constant 0 : i32
    %c0_i32_0 = arith.constant 0 : i32
    %c0_i32_1 = arith.constant 0 : i32
    return %c0_i32, %c0_i32_0 : i32, i32
  }
  func.func @transform_7(%arg0: i32) -> (i32, i32) {
    %c0_i32 = arith.constant 0 : i32
    %c0_i32_0 = arith.constant 0 : i32
    %c0_i32_1 = arith.constant 0 : i32
    return %c0_i32, %c0_i32_0 : i32, i32
  }
  func.func @transform_8(%arg0: i32) -> (i32, i32) {
    %c0_i32 = arith.constant 0 : i32
    %c0_i32_0 = arith.constant 0 : i32
    %c0_i32_1 = arith.constant 0 : i32
    return %c0_i32, %c0_i32_0 : i32, i32
  }
  func.func @transform_9(%arg0: i32) -> (i32, i32) {
    %c0_i32 = arith.constant 0 : i32
    %c0_i32_0 = arith.constant 0 : i32
    %c0_i32_1 = arith.constant 0 : i32
    return %c0_i32, %c0_i32_0 : i32, i32
  }
  func.func @transform_10(%arg0: i32) -> (i32, i32) {
    %c0_i32 = arith.constant 0 : i32
    %c0_i32_0 = arith.constant 0 : i32
    %c0_i32_1 = arith.constant 0 : i32
    return %c0_i32, %c0_i32_0 : i32, i32
  }
  func.func @transform_11(%arg0: i32) -> (i32, i32) {
    %c0_i32 = arith.constant 0 : i32
    %c0_i32_0 = arith.constant 0 : i32
    return %arg0, %c0_i32 : i32, i32
  }
}

</mosaic_0001>

<bundles_post_ra>
// kernel: cnn_forward.1
= control target key start
LH: loop header
LB: loop body
LE: loop exit
PB: predicated region body
PF: predicated region fallthrough
CT: control target
= control target key end

     0   :  { %16 = vsyncpa [#allocation3], 0  ;;  %s2272_s0 = inlined_call_operand.vmem [shape: bf16[2,256], index: 0, kind: input, shape index: {}]   ;;  %s2273_s1 = inlined_call_operand.hbm [shape: bf16[256,512], index: 1, kind: input, shape index: {}]   ;;  %s2274_s2 = inlined_call_operand.hbm [shape: bf16[512,256], index: 2, kind: input, shape index: {}]   ;;  %s2275_s3 = inlined_call_operand.hbm [shape: bf16[256,128], index: 3, kind: input, shape index: {}]   ;;  %s2276_s4 = inlined_call_operand.vmem [shape: bf16[128,128], index: 4, kind: input, shape index: {}]   ;;  %s2277_s5 = inlined_call_operand.vmem [shape: f32[1,512], index: 5, kind: input, shape index: {}]   ;;  %s2278_s6 = inlined_call_operand.vmem [shape: f32[1,256], index: 6, kind: input, shape index: {}]   ;;  %s2279_s7 = inlined_call_operand.vmem [shape: f32[1,128], index: 7, kind: input, shape index: {}]   ;;  %s2280_s8 = inlined_call_operand.vmem [shape: f32[1,128], index: 8, kind: input, shape index: {}]   ;;  %s2281_s9 = inlined_call_operand.hbm [shape: bf16[128,128], index: 9, kind: input, shape index: {}]   ;;  %s2282_s10 = inlined_call_operand.vmem [shape: f32[1,128], index: 10, kind: input, shape index: {}]   ;;  %s2283_s11 = inlined_call_operand.hbm [shape: f32[2,128], index: 11, kind: output, shape index: {}]  }
   0x1   :  { %17 = vsyncpa [#allocation6], 0 }
   0x2   :  { %18 = vsyncpa [#allocation9], 0 }
   0x3   :  { %19 = vsyncpa [#allocation4], 0  ;;  %s2108_s17 = smov [#allocation5]  }
   0x4   :  { %s39_s18 = sshll.u32 %s2108_s17, 4  ;;  %s40_s18 = int_to_ptr.vmem [resolvable:$true] %s39_s18 }
   0x5   :  { %s2008_s19 = scalar_lea.vmem %s40_s18, 8192  ;;  %p2013_p1 = scmp.lt.s32.totalorder %s40_s18, %s40_s18 }
   0x6   :  { %p2009_p0 = scmp.ne.s32.totalorder %s40_s18, %s2008_s19  ;;  %p2014_p2 = scmp.lt.s32.totalorder %s2008_s19, %s2008_s19 }
   0x8   :  { %p2015_p3 = por %p2014_p2, %p2013_p1 }
   0xa   :  { %p2016_p4 = pnand %p2015_p3, %p2009_p0 }
   0xc   :  { %2019 = shalt.err (!%p2016_p4)
}
   0xd   :  { %s2109_s20 = smov 128   ;;  %s2110_s21 = smov 8  }
   0xe   :  { %45 = dma.hbm_to_vmem [thread:$0]  %s2274_s2, 8192, %s40_s18, [#allocation6], %s2109_s20, %s2109_s20, %s2110_s21  }
   0xf   :  { %s2111_s24 = smov [#allocation2]  }
  0x10   :  { %s27_s25 = sshll.u32 %s2111_s24, 4  ;;  %s28_s25 = int_to_ptr.vmem [resolvable:$true] %s27_s25 }
  0x11   :  { %s2028_s26 = scalar_lea.vmem %s28_s25, 8192  ;;  %p2033_p6 = scmp.lt.s32.totalorder %s28_s25, %s28_s25 }
  0x12   :  { %p2029_p5 = scmp.ne.s32.totalorder %s28_s25, %s2028_s26  ;;  %p2034_p7 = scmp.lt.s32.totalorder %s2028_s26, %s2028_s26 }
  0x14   :  { %p2035_p8 = por %p2034_p7, %p2033_p6 }
  0x16   :  { %p2036_p9 = pnand %p2035_p8, %p2029_p5 }
  0x18   :  { %2039 = shalt.err (!%p2036_p9)
}
  0x19   :  { %s2112_s27 = smov 256   ;;  %s2113_s28 = smov 16  }
  0x1a   :  { %33 = dma.hbm_to_vmem [thread:$0]  %s2273_s1, 8192, %s28_s25, [#allocation3], %s2112_s27, %s2112_s27, %s2113_s28  }
  0x1b   :  { %s2114_s12 = smov [#allocation7]  }
  0x1c   :  { %s51_s13 = sshll.u32 %s2114_s12, 4  ;;  %s52_s13 = int_to_ptr.vmem [resolvable:$true] %s51_s13 }
  0x1d   :  { %s2048_s2 = scalar_lea.vmem %s52_s13, 2048  ;;  %p2053_p11 = scmp.lt.s32.totalorder %s52_s13, %s52_s13 }
  0x1e   :  { %p2049_p10 = scmp.ne.s32.totalorder %s52_s13, %s2048_s2  ;;  %p2054_p12 = scmp.lt.s32.totalorder %s2048_s2, %s2048_s2 }
  0x20   :  { %p2055_p13 = por %p2054_p12, %p2053_p11 }
  0x22   :  { %p2056_p0 = pnand %p2055_p13, %p2049_p10 }
  0x24   :  { %2059 = shalt.err (!%p2056_p0)
}
  0x25   :  { %s2115_s14 = smov 64   ;;  %s2116_s15 = smov 4  }
  0x26   :  { %57 = dma.hbm_to_vmem [thread:$0]  %s2275_s3, 2048, %s52_s13, [#allocation6], %s2115_s14, %s2115_s14, %s2116_s15  }
  0x27   :  { %s2117_s18 = smov [#allocation8]  }
  0x28   :  { %s73_s19 = sshll.u32 %s2117_s18, 4  ;;  %s74_s19 = int_to_ptr.vmem [resolvable:$true] %s73_s19 }
  0x29   :  { %s2068_s1 = scalar_lea.vmem %s74_s19, 1024  ;;  %p2073_p2 = scmp.lt.s32.totalorder %s74_s19, %s74_s19 }
  0x2a   :  { %p2069_p1 = scmp.ne.s32.totalorder %s74_s19, %s2068_s1  ;;  %p2074_p3 = scmp.lt.s32.totalorder %s2068_s1, %s2068_s1 }
  0x2c   :  { %p2075_p4 = por %p2074_p3, %p2073_p2 }
  0x2e   :  { %p2076_p5 = pnand %p2075_p4, %p2069_p1 }
  0x30   :  { %2079 = shalt.err (!%p2076_p5)
}
  0x31   :  { %79 = dma.hbm_to_vmem [thread:$0]  %s2281_s9, 1024, %s74_s19, [#allocation9], %s2115_s14, %s2115_s14, %s2116_s15  }
  0x32   :  { %2100 = dma.done.wait [#allocation3], 8192  }
  0x33   :  { %2101 = vsyncadd [#allocation3], 4294959104 }
  0x34   :  { %2102 = dma.done.wait [#allocation6], 10240  }
  0x35   :  { %2103 = vsyncadd [#allocation6], 4294957056 }
  0x36   :  { %2104 = dma.done.wait [#allocation9], 1024  }
  0x37   :  { %2105 = vsyncadd [#allocation9], 4294966272  ;;  %v1776_v0 = vld [vmem:[#allocation2 + $0xe4] ss:$16 sps:$4 sm:$0xff]   ;;  %v1778_v1 = vld [vmem:[#allocation2 + $0xec] ss:$16 sps:$4 sm:$0xff]   ;;  %v162_v38 = vlaneseq }
  0x38   :  { %527 = vmatprep.subr.bf16.mxu0 %v1776_v0  ;;  %v1780_v2 = vld [vmem:[#allocation2 + $0xe0] ss:$16 sps:$4 sm:$0xff]   ;;  %v1781_v3 = vld [vmem:[#allocation2 + $0xe8] ss:$16 sps:$4 sm:$0xff]   ;;  %568 = vmatprep.subr.bf16.mxu1 %v1778_v1  ;;  %v1782_v4 = vld [vmem:[#allocation2 + $0xc4] ss:$16 sps:$4 sm:$0xff]  }
  0x39   :  { %528 = vmatpush1.bf16.msra.mxu0 %v1780_v2  ;;  %569 = vmatpush1.bf16.msra.mxu1 %v1781_v3  ;;  %v1784_v5 = vld [vmem:[#allocation2 + $0xcc] ss:$16 sps:$4 sm:$0xff]   ;;  %v1786_v6 = vld [vmem:[#allocation2 + $0xc0] ss:$16 sps:$4 sm:$0xff]   ;;  %v1787_v7 = vld [vmem:[#allocation2 + $0xc8] ss:$16 sps:$4 sm:$0xff]  }
  0x3a   :  { %529 = vmatprep.subr.bf16.mxu0 %v1782_v4  ;;  %570 = vmatprep.subr.bf16.mxu1 %v1784_v5  ;;  %v1788_v8 = vld [vmem:[#allocation2 + $0xa4] ss:$16 sps:$4 sm:$0xff]   ;;  %v1790_v9 = vld [vmem:[#allocation2 + $0xac] ss:$16 sps:$4 sm:$0xff]   ;;  %v1792_v10 = vld [vmem:[#allocation2 + $0xa0] ss:$16 sps:$4 sm:$0xff]  }
  0x3b   :  { %v1793_v11 = vld [vmem:[#allocation2 + $0xa8] ss:$16 sps:$4 sm:$0xff]   ;;  %v1794_v12 = vld [vmem:[#allocation2 + $0x84] ss:$16 sps:$4 sm:$0xff]   ;;  %v1796_v13 = vld [vmem:[#allocation2 + $0x8c] ss:$16 sps:$4 sm:$0xff]  }
  0x3c   :  { %v1798_v14 = vld [vmem:[#allocation2 + $0x80] ss:$16 sps:$4 sm:$0xff]   ;;  %v1799_v15 = vld [vmem:[#allocation2 + $0x88] ss:$16 sps:$4 sm:$0xff]   ;;  %v1800_v16 = vld [vmem:[#allocation2 + $0x64] ss:$16 sps:$4 sm:$0xff]  }
  0x3d   :  { %530 = vmatpush1.bf16.msra.mxu0 %v1786_v6  ;;  %571 = vmatpush1.bf16.msra.mxu1 %v1787_v7  ;;  %v1802_v17 = vld [vmem:[#allocation2 + $0x6c] ss:$16 sps:$4 sm:$0xff]   ;;  %v1804_v18 = vld [vmem:[#allocation2 + $0x60] ss:$16 sps:$4 sm:$0xff]   ;;  %v1805_v19 = vld [vmem:[#allocation2 + $0x68] ss:$16 sps:$4 sm:$0xff]  }
  0x3e   :  { %531 = vmatprep.subr.bf16.mxu0 %v1788_v8  ;;  %572 = vmatprep.subr.bf16.mxu1 %v1790_v9  ;;  %v1806_v20 = vld [vmem:[#allocation2 + $0x44] ss:$16 sps:$4 sm:$0xff]   ;;  %v1808_v21 = vld [vmem:[#allocation2 + $0x4c] ss:$16 sps:$4 sm:$0xff]   ;;  %v1810_v22 = vld [vmem:[#allocation2 + $0x40] ss:$16 sps:$4 sm:$0xff]  }
  0x3f   :  { %v1811_v23 = vld [vmem:[#allocation2 + $0x48] ss:$16 sps:$4 sm:$0xff]   ;;  %v1812_v24 = vld [vmem:[#allocation2 + $0x24] ss:$16 sps:$4 sm:$0xff]   ;;  %v1814_v25 = vld [vmem:[#allocation2 + $0x2c] ss:$16 sps:$4 sm:$0xff]  }
  0x40   :  { %v1816_v26 = vld [vmem:[#allocation2 + $0x20] ss:$16 sps:$4 sm:$0xff]   ;;  %v1817_v27 = vld [vmem:[#allocation2 + $0x28] ss:$16 sps:$4 sm:$0xff]   ;;  %v1818_v28 = vld [vmem:[#allocation2 + $0x4] ss:$16 sps:$4 sm:$0xff]  }
  0x41   :  { %532 = vmatpush1.bf16.msra.mxu0 %v1792_v10  ;;  %573 = vmatpush1.bf16.msra.mxu1 %v1793_v11  ;;  %v1820_v29 = vld [vmem:[#allocation2 + $0xc] ss:$16 sps:$4 sm:$0xff]   ;;  %v1822_v30 = vld [vmem:[#allocation2] ss:$16 sps:$4 sm:$0xff]   ;;  %v1823_v31 = vld [vmem:[#allocation2 + $0x8] ss:$16 sps:$4 sm:$0xff]  }
  0x42   :  { %533 = vmatprep.subr.bf16.mxu0 %v1794_v12  ;;  %574 = vmatprep.subr.bf16.mxu1 %v1796_v13  ;;  %v1824_v32 = vld [vmem:[#allocation2 + $0x1e4] ss:$16 sps:$4 sm:$0xff]   ;;  %v1826_v33 = vld [vmem:[#allocation2 + $0x1ec] ss:$16 sps:$4 sm:$0xff]   ;;  %v1828_v34 = vld [vmem:[#allocation2 + $0x1e0] ss:$16 sps:$4 sm:$0xff]  }
  0x43   :  { %v1829_v35 = vld [vmem:[#allocation2 + $0x1e8] ss:$16 sps:$4 sm:$0xff]   ;;  %v1830_v36 = vld [vmem:[#allocation2 + $0x1c4] ss:$16 sps:$4 sm:$0xff]   ;;  %v1832_v37 = vld [vmem:[#allocation2 + $0x1cc] ss:$16 sps:$4 sm:$0xff]  }
  0x44   :  { %v2118_v39 = vmov 1966171168   ;;  %v1834_v41 = vld [vmem:[#allocation2 + $0x1c0] ss:$16 sps:$4 sm:$0xff]   ;;  %v1835_v42 = vld [vmem:[#allocation2 + $0x1c8] ss:$16 sps:$4 sm:$0xff]  }
  0x45   :  { %534 = vmatpush1.bf16.msra.mxu0 %v1798_v14  ;;  %575 = vmatpush1.bf16.msra.mxu1 %v1799_v15  ;;  %v192_v40 = vunpack.c.l.s4 %v2118_v39  ;;  %v1836_v43 = vld [vmem:[#allocation2 + $0x1a4] ss:$16 sps:$4 sm:$0xff]   ;;  %v1838_v44 = vld [vmem:[#allocation2 + $0x1ac] ss:$16 sps:$4 sm:$0xff]   ;;  %v2194_v45 = vshrl.u32 %v162_v38, 7  ;;  %vm2120_vm0 = vmmov 0  }
  0x46   :  { %535 = vmatprep.subr.bf16.mxu0 %v1800_v16  ;;  %576 = vmatprep.subr.bf16.mxu1 %v1802_v17  ;;  %v1840_v47 = vld [vmem:[#allocation2 + $0x1a0] ss:$16 sps:$4 sm:$0xff]   ;;  %v1841_v48 = vld [vmem:[#allocation2 + $0x1a8] ss:$16 sps:$4 sm:$0xff]   ;;  %v1842_v49 = vld [vmem:[#allocation2 + $0x184] ss:$16 sps:$4 sm:$0xff]  }
  0x47   :  { %v193_v46 = vunpack.c.0.s8 %v192_v40  ;;  %v1844_v50 = vld [vmem:[#allocation2 + $0x18c] ss:$16 sps:$4 sm:$0xff]   ;;  %v1518_v52 = vld.sshfl [vmem:[%s2272_s0] sm:$0x11 pattern:$0x75316420] }
  0x48   :  { %v1846_v53 = vld [vmem:[#allocation2 + $0x180] ss:$16 sps:$4 sm:$0xff]   ;;  %v1847_v54 = vld [vmem:[#allocation2 + $0x188] ss:$16 sps:$4 sm:$0xff]   ;;  %v190_v55 = vcombine.high %v1518_v52, %v1518_v52  ;;  %v1848_v56 = vld [vmem:[#allocation2 + $0x164] ss:$16 sps:$4 sm:$0xff]  }
  0x49   :  { %536 = vmatpush1.bf16.msra.mxu0 %v1804_v18  ;;  %577 = vmatpush1.bf16.msra.mxu1 %v1805_v19  ;;  %v196_v51 = vsub.s32 %v193_v46, %v2194_v45  ;;  %v1850_v57 = vld [vmem:[#allocation2 + $0x16c] ss:$16 sps:$4 sm:$0xff]   ;;  %v1852_v59 = vld [vmem:[#allocation2 + $0x160] ss:$16 sps:$4 sm:$0xff]   ;;  %v1853_v60 = vld [vmem:[#allocation2 + $0x168] ss:$16 sps:$4 sm:$0xff]  }
  0x4a   :  { %537 = vmatprep.subr.bf16.mxu0 %v1806_v20  ;;  %578 = vmatprep.subr.bf16.mxu1 %v1808_v21  ;;  %v1854_v61 = vld [vmem:[#allocation2 + $0x144] ss:$16 sps:$4 sm:$0xff]   ;;  %v1856_v62 = vld [vmem:[#allocation2 + $0x14c] ss:$16 sps:$4 sm:$0xff]   ;;  %v1858_v63 = vld [vmem:[#allocation2 + $0x140] ss:$16 sps:$4 sm:$0xff]  }
  0x4b   :  { %v204_v58 = vrot.slane %v190_v55, %v196_v51  ;;  %v1859_v0 = vld [vmem:[#allocation2 + $0x148] ss:$16 sps:$4 sm:$0xff]   ;;  %v1860_v1 = vld [vmem:[#allocation2 + $0x124] ss:$16 sps:$4 sm:$0xff]   ;;  %v1862_v2 = vld [vmem:[#allocation2 + $0x12c] ss:$16 sps:$4 sm:$0xff]   ;;  %v197_v11 = vrot.slane %v1518_v52, %v196_v51 }
  0x4c   :  { %v1864_v3 = vld [vmem:[#allocation2 + $0x120] ss:$16 sps:$4 sm:$0xff]   ;;  %v1865_v4 = vld [vmem:[#allocation2 + $0x128] ss:$16 sps:$4 sm:$0xff]   ;;  %v1866_v5 = vld [vmem:[#allocation2 + $0x104] ss:$16 sps:$4 sm:$0xff]  }
  0x4d   :  { %538 = vmatpush1.bf16.msra.mxu0 %v1810_v22  ;;  %579 = vmatpush1.bf16.msra.mxu1 %v1811_v23  ;;  %v1868_v6 = vld [vmem:[#allocation2 + $0x10c] ss:$16 sps:$4 sm:$0xff]   ;;  %v1870_v7 = vld [vmem:[#allocation2 + $0x100] ss:$16 sps:$4 sm:$0xff]   ;;  %v1871_v8 = vld [vmem:[#allocation2 + $0x108] ss:$16 sps:$4 sm:$0xff]  }
  0x4e   :  { %539 = vmatprep.subr.bf16.mxu0 %v1812_v24  ;;  %580 = vmatprep.subr.bf16.mxu1 %v1814_v25  ;;  %v1874_v9 = vld [vmem:[#allocation5 + $0x74] ss:$8 sps:$4 sm:$0xff]   ;;  %v1872_v12 = vld [vmem:[#allocation5 + $0x70] ss:$8 sps:$4 sm:$0xff]   ;;  %v1880_v14 = vld [vmem:[#allocation5 + $0x64] ss:$8 sps:$4 sm:$0xff]  }
  0x4f   :  { %559 = vmatprep.mubr.bf16.mxu0 %v204_v58  ;;  %600 = vmatprep.mubr.bf16.mxu1 %v204_v58  ;;  %v1877_v10 = vld [vmem:[#allocation5 + $0x174] ss:$8 sps:$4 sm:$0xff]   ;;  %v1875_v13 = vld [vmem:[#allocation5 + $0x170] ss:$8 sps:$4 sm:$0xff]   ;;  %v1883_v15 = vld [vmem:[#allocation5 + $0x164] ss:$8 sps:$4 sm:$0xff]  }
  0x50   :  { %v1878_v16 = vld [vmem:[#allocation5 + $0x60] ss:$8 sps:$4 sm:$0xff]   ;;  %v1886_v18 = vld [vmem:[#allocation5 + $0x54] ss:$8 sps:$4 sm:$0xff]   ;;  %v1884_v20 = vld [vmem:[#allocation5 + $0x50] ss:$8 sps:$4 sm:$0xff]  }
  0x51   :  { %540 = vmatpush1.bf16.msra.mxu0 %v1816_v26  ;;  %581 = vmatpush1.bf16.msra.mxu1 %v1817_v27  ;;  %v1881_v17 = vld [vmem:[#allocation5 + $0x160] ss:$8 sps:$4 sm:$0xff]   ;;  %v1889_v19 = vld [vmem:[#allocation5 + $0x154] ss:$8 sps:$4 sm:$0xff]   ;;  %v1887_v21 = vld [vmem:[#allocation5 + $0x150] ss:$8 sps:$4 sm:$0xff]  }
  0x52   :  { %541 = vmatprep.subr.bf16.mxu0 %v1818_v28  ;;  %582 = vmatprep.subr.bf16.mxu1 %v1820_v29  ;;  %v1892_v22 = vld [vmem:[#allocation5 + $0x44] ss:$8 sps:$4 sm:$0xff]   ;;  %v1890_v24 = vld [vmem:[#allocation5 + $0x40] ss:$8 sps:$4 sm:$0xff]   ;;  %v1898_v26 = vld [vmem:[#allocation5 + $0x34] ss:$8 sps:$4 sm:$0xff]  }
  0x53   :  { %v1895_v23 = vld [vmem:[#allocation5 + $0x144] ss:$8 sps:$4 sm:$0xff]   ;;  %v1893_v25 = vld [vmem:[#allocation5 + $0x140] ss:$8 sps:$4 sm:$0xff]   ;;  %v1901_v27 = vld [vmem:[#allocation5 + $0x134] ss:$8 sps:$4 sm:$0xff]  }
  0x54   :  { %v1896_v28 = vld [vmem:[#allocation5 + $0x30] ss:$8 sps:$4 sm:$0xff]   ;;  %v1916_v38 = vld [vmem:[#allocation5 + $0x4] ss:$8 sps:$4 sm:$0xff]   ;;  %v1914_v40 = vld [vmem:[#allocation5] ss:$8 sps:$4 sm:$0xff]  }
  0x55   :  { %542 = vmatpush1.bf16.msra.mxu0 %v1822_v30  ;;  %583 = vmatpush1.bf16.msra.mxu1 %v1823_v31  ;;  %v1899_v29 = vld [vmem:[#allocation5 + $0x130] ss:$8 sps:$4 sm:$0xff]   ;;  %v1904_v30 = vld [vmem:[#allocation5 + $0x24] ss:$8 sps:$4 sm:$0xff]   ;;  %v1934_v51 = vld [vmem:[#allocation5 + $0xd4] ss:$8 sps:$4 sm:$0xff]  }
  0x56   :  { %543 = vmatprep.subr.bf16.mxu0 %v1824_v32  ;;  %584 = vmatprep.subr.bf16.mxu1 %v1826_v33  ;;  %v1907_v31 = vld [vmem:[#allocation5 + $0x124] ss:$8 sps:$4 sm:$0xff]   ;;  %v1902_v32 = vld [vmem:[#allocation5 + $0x20] ss:$8 sps:$4 sm:$0xff]   ;;  %v1923_v46 = vld [vmem:[#allocation5 + $0x1f0] ss:$8 sps:$4 sm:$0xff]  }
  0x57   :  { %v1905_v33 = vld [vmem:[#allocation5 + $0x120] ss:$8 sps:$4 sm:$0xff]   ;;  %v1919_v39 = vld [vmem:[#allocation5 + $0x104] ss:$8 sps:$4 sm:$0xff]   ;;  %v1937_v52 = vld [vmem:[#allocation5 + $0x1d4] ss:$8 sps:$4 sm:$0xff]  }
  0x58   :  { %v1940_v55 = vld [vmem:[#allocation5 + $0xc4] ss:$8 sps:$4 sm:$0xff]   ;;  %v1941_v58 = vld [vmem:[#allocation5 + $0x1c0] ss:$8 sps:$4 sm:$0xff]   ;;  %s2121_s3 = smov [#allocation10]  }
  0x59   :  { %544 = vmatpush2.bf16.msra.mxu0 %v1828_v34  ;;  %585 = vmatpush2.bf16.msra.mxu1 %v1829_v35  ;;  %v1910_v34 = vld [vmem:[#allocation5 + $0x14] ss:$8 sps:$4 sm:$0xff]   ;;  %s1507_s9 = sshll.u32 %s2121_s3, 4  ;;  %s1508_s9 = int_to_ptr.vmem [resolvable:$true] %s1507_s9 }
  0x5a   :  { %545 = vmatprep.subr.bf16.mxu0 %v1830_v36  ;;  %586 = vmatprep.subr.bf16.mxu1 %v1832_v37  ;;  %v1913_v35 = vld [vmem:[#allocation5 + $0x114] ss:$8 sps:$4 sm:$0xff]   ;;  %v1908_v36 = vld [vmem:[#allocation5 + $0x10] ss:$8 sps:$4 sm:$0xff]   ;;  %p2085_p7 = scmp.lt.s32.totalorder %s1508_s9, %s1508_s9 }
  0x5b   :  { %v1911_v37 = vld [vmem:[#allocation5 + $0x110] ss:$8 sps:$4 sm:$0xff]  }
  0x5d   :  { %546 = vmatpush2.bf16.msra.mxu0 %v1834_v41  ;;  %587 = vmatpush2.bf16.msra.mxu1 %v1835_v42  ;;  %v1917_v41 = vld [vmem:[#allocation5 + $0x100] ss:$8 sps:$4 sm:$0xff]   ;;  %v1922_v42 = vld [vmem:[#allocation5 + $0xf4] ss:$8 sps:$4 sm:$0xff]  }
  0x5e   :  { %547 = vmatprep.subr.bf16.mxu0 %v1836_v43  ;;  %588 = vmatprep.subr.bf16.mxu1 %v1838_v44  ;;  %v1925_v43 = vld [vmem:[#allocation5 + $0x1f4] ss:$8 sps:$4 sm:$0xff]   ;;  %v1920_v44 = vld [vmem:[#allocation5 + $0xf0] ss:$8 sps:$4 sm:$0xff]  }
  0x61   :  { %548 = vmatpush2.bf16.msra.mxu0 %v1840_v47  ;;  %589 = vmatpush2.bf16.msra.mxu1 %v1841_v48  ;;  %v1928_v47 = vld [vmem:[#allocation5 + $0xe4] ss:$8 sps:$4 sm:$0xff]  }
  0x62   :  { %549 = vmatprep.subr.bf16.mxu0 %v1842_v49  ;;  %590 = vmatprep.subr.bf16.mxu1 %v1844_v50  ;;  %v1931_v48 = vld [vmem:[#allocation5 + $0x1e4] ss:$8 sps:$4 sm:$0xff]   ;;  %v1926_v49 = vld [vmem:[#allocation5 + $0xe0] ss:$8 sps:$4 sm:$0xff]  }
  0x63   :  { %v1929_v50 = vld [vmem:[#allocation5 + $0x1e0] ss:$8 sps:$4 sm:$0xff]  }
  0x65   :  { %550 = vmatpush2.bf16.msra.mxu0 %v1846_v53  ;;  %591 = vmatpush2.bf16.msra.mxu1 %v1847_v54  ;;  %v1932_v53 = vld [vmem:[#allocation5 + $0xd0] ss:$8 sps:$4 sm:$0xff]  }
  0x66   :  { %551 = vmatprep.subr.bf16.mxu0 %v1848_v56  ;;  %592 = vmatprep.subr.bf16.mxu1 %v1850_v57  ;;  %v1935_v54 = vld [vmem:[#allocation5 + $0x1d0] ss:$8 sps:$4 sm:$0xff]   ;;  %v1943_v56 = vld [vmem:[#allocation5 + $0x1c4] ss:$8 sps:$4 sm:$0xff]   ;;  %v1938_v57 = vld [vmem:[#allocation5 + $0xc0] ss:$8 sps:$4 sm:$0xff]  }
  0x69   :  { %552 = vmatpush2.bf16.msra.mxu0 %v1852_v59  ;;  %593 = vmatpush2.bf16.msra.mxu1 %v1853_v60  ;;  %v1946_v59 = vld [vmem:[#allocation5 + $0xb4] ss:$8 sps:$4 sm:$0xff]  }
  0x6a   :  { %553 = vmatprep.subr.bf16.mxu0 %v1854_v61  ;;  %594 = vmatprep.subr.bf16.mxu1 %v1856_v62  ;;  %v1949_v60 = vld [vmem:[#allocation5 + $0x1b4] ss:$8 sps:$4 sm:$0xff]   ;;  %v1944_v61 = vld [vmem:[#allocation5 + $0xb0] ss:$8 sps:$4 sm:$0xff]  }
  0x6b   :  { %v1947_v62 = vld [vmem:[#allocation5 + $0x1b0] ss:$8 sps:$4 sm:$0xff]  }
  0x6d   :  { %554 = vmatpush2.bf16.msra.mxu0 %v1858_v63  ;;  %595 = vmatpush2.bf16.msra.mxu1 %v1859_v0  ;;  %v1952_v63 = vld [vmem:[#allocation5 + $0xa4] ss:$8 sps:$4 sm:$0xff]  }
  0x6e   :  { %555 = vmatprep.subr.bf16.mxu0 %v1860_v1  ;;  %596 = vmatprep.subr.bf16.mxu1 %v1862_v2  ;;  %v1955_v0 = vld [vmem:[#allocation5 + $0x1a4] ss:$8 sps:$4 sm:$0xff]   ;;  %v1950_v1 = vld [vmem:[#allocation5 + $0xa0] ss:$8 sps:$4 sm:$0xff]  }
  0x6f   :  { %v1953_v2 = vld [vmem:[#allocation5 + $0x1a0] ss:$8 sps:$4 sm:$0xff]  }
  0x71   :  { %556 = vmatpush2.bf16.msra.mxu0 %v1864_v3  ;;  %597 = vmatpush2.bf16.msra.mxu1 %v1865_v4  ;;  %v1958_v3 = vld [vmem:[#allocation5 + $0x94] ss:$8 sps:$4 sm:$0xff]  }
  0x72   :  { %557 = vmatprep.subr.bf16.mxu0 %v1866_v5  ;;  %598 = vmatprep.subr.bf16.mxu1 %v1868_v6  ;;  %v1961_v4 = vld [vmem:[#allocation5 + $0x194] ss:$8 sps:$4 sm:$0xff]   ;;  %v1956_v5 = vld [vmem:[#allocation5 + $0x90] ss:$8 sps:$4 sm:$0xff]  }
  0x73   :  { %v1959_v6 = vld [vmem:[#allocation5 + $0x190] ss:$8 sps:$4 sm:$0xff]  }
  0x75   :  { %558 = vmatpush2.bf16.msra.mxu0 %v1870_v7  ;;  %599 = vmatpush2.bf16.msra.mxu1 %v1871_v8  ;;  %v1964_v7 = vld [vmem:[#allocation5 + $0x84] ss:$8 sps:$4 sm:$0xff]  }
  0x76   :  { %1013 = vmatprep.subr.bf16.mxu0 %v1874_v9  ;;  %1054 = vmatprep.subr.bf16.mxu1 %v1877_v10  ;;  %v1967_v8 = vld [vmem:[#allocation5 + $0x184] ss:$8 sps:$4 sm:$0xff]   ;;  %v1962_v9 = vld [vmem:[#allocation5 + $0x80] ss:$8 sps:$4 sm:$0xff]  }
  0x77   :  { %v1965_v10 = vld [vmem:[#allocation5 + $0x180] ss:$8 sps:$4 sm:$0xff]  }
  0x78   :  { %560 = vmatmul.mubr.bf16.vlgmr.msra.gmra.mxu0 %v197_v11  ;;  %601 = vmatmul.mubr.bf16.vlgmr.msra.gmra.mxu1 %v197_v11  ;;  %v1968_v11 = vld [vmem:[#allocation7 + $0x78] sm:$0xff]  }
  0x79   :  { %1014 = vmatpush1.bf16.msra.mxu0 %v1872_v12  ;;  %1055 = vmatpush1.bf16.msra.mxu1 %v1875_v13  ;;  %v164_v12 = vsub.s32 0, %v2194_v45  ;;  %v172_v13 = vsub.s32 2, %v2194_v45 }
  0x7a   :  { %1015 = vmatprep.subr.bf16.mxu0 %v1880_v14  ;;  %1056 = vmatprep.subr.bf16.mxu1 %v1883_v15  ;;  %v160_v14 = vld [vmem:[%s2277_s5] sm:$0xf]  ;;  %v168_v15 = vsub.s32 1, %v2194_v45 }
  0x7d   :  { %1016 = vmatpush1.bf16.msra.mxu0 %v1878_v16  ;;  %1057 = vmatpush1.bf16.msra.mxu1 %v1881_v17  ;;  %v176_v16 = vsub.s32 3, %v2194_v45  ;;  %v165_v17 = vrot.slane %v160_v14, %v164_v12  ;;  %v1989_v45 = vld [vmem:[%s2276_s4 + $0x10] sm:$0xff]  }
  0x7e   :  { %1017 = vmatprep.subr.bf16.mxu0 %v1886_v18  ;;  %1058 = vmatprep.subr.bf16.mxu1 %v1889_v19  ;;  %v173_v18 = vrot.slane %v160_v14, %v172_v13  ;;  %v169_v19 = vrot.slane %v160_v14, %v168_v15 }
  0x81   :  { %1018 = vmatpush1.bf16.msra.mxu0 %v1884_v20  ;;  %1059 = vmatpush1.bf16.msra.mxu1 %v1887_v21  ;;  %v177_v20 = vrot.slane %v160_v14, %v176_v16 }
  0x82   :  { %1019 = vmatprep.subr.bf16.mxu0 %v1892_v22  ;;  %1060 = vmatprep.subr.bf16.mxu1 %v1895_v23 }
  0x85   :  { %1020 = vmatpush1.bf16.msra.mxu0 %v1890_v24  ;;  %1061 = vmatpush1.bf16.msra.mxu1 %v1893_v25 }
  0x86   :  { %1021 = vmatprep.subr.bf16.mxu0 %v1898_v26  ;;  %1062 = vmatprep.subr.bf16.mxu1 %v1901_v27 }
  0x89   :  { %1022 = vmatpush1.bf16.msra.mxu0 %v1896_v28  ;;  %1063 = vmatpush1.bf16.msra.mxu1 %v1899_v29 }
  0x8a   :  { %1023 = vmatprep.subr.bf16.mxu0 %v1904_v30  ;;  %1064 = vmatprep.subr.bf16.mxu1 %v1907_v31 }
  0x8d   :  { %1024 = vmatpush1.bf16.msra.mxu0 %v1902_v32  ;;  %1065 = vmatpush1.bf16.msra.mxu1 %v1905_v33 }
  0x8e   :  { %1025 = vmatprep.subr.bf16.mxu0 %v1910_v34  ;;  %1066 = vmatprep.subr.bf16.mxu1 %v1913_v35 }
  0x91   :  { %1026 = vmatpush1.bf16.msra.mxu0 %v1908_v36  ;;  %1067 = vmatpush1.bf16.msra.mxu1 %v1911_v37 }
  0x92   :  { %1027 = vmatprep.subr.bf16.mxu0 %v1916_v38  ;;  %1068 = vmatprep.subr.bf16.mxu1 %v1919_v39 }
  0x95   :  { %1028 = vmatpush1.bf16.msra.mxu0 %v1914_v40  ;;  %1069 = vmatpush1.bf16.msra.mxu1 %v1917_v41  ;;  %v1969_v40 = vld [vmem:[#allocation7 + $0x38] sm:$0xff]  }
  0x96   :  { %1029 = vmatprep.subr.bf16.mxu0 %v1922_v42  ;;  %1070 = vmatprep.subr.bf16.mxu1 %v1925_v43  ;;  %v1970_v42 = vld [vmem:[#allocation7 + $0x70] sm:$0xff]  }
  0x97   :  { %v1971_v43 = vld [vmem:[#allocation7 + $0x30] sm:$0xff]  }
  0x99   :  { %1030 = vmatpush2.bf16.msra.mxu0 %v1920_v44  ;;  %1071 = vmatpush2.bf16.msra.mxu1 %v1923_v46  ;;  %v1972_v44 = vld [vmem:[#allocation7 + $0x68] sm:$0xff]  }
  0x9a   :  { %1031 = vmatprep.subr.bf16.mxu0 %v1928_v47  ;;  %1072 = vmatprep.subr.bf16.mxu1 %v1931_v48  ;;  %v1973_v46 = vld [vmem:[#allocation7 + $0x28] sm:$0xff]   ;;  %v1974_v47 = vld [vmem:[#allocation7 + $0x60] sm:$0xff]  }
  0x9b   :  { %v1975_v48 = vld [vmem:[#allocation7 + $0x20] sm:$0xff]  }
  0x9d   :  { %1032 = vmatpush2.bf16.msra.mxu0 %v1926_v49  ;;  %1073 = vmatpush2.bf16.msra.mxu1 %v1929_v50  ;;  %v1976_v49 = vld [vmem:[#allocation7 + $0x58] sm:$0xff]  }
  0x9e   :  { %1033 = vmatprep.subr.bf16.mxu0 %v1934_v51  ;;  %1074 = vmatprep.subr.bf16.mxu1 %v1937_v52  ;;  %v1977_v50 = vld [vmem:[#allocation7 + $0x18] sm:$0xff]   ;;  %v1978_v51 = vld [vmem:[#allocation7 + $0x50] sm:$0xff]  }
  0x9f   :  { %v1979_v52 = vld [vmem:[#allocation7 + $0x10] sm:$0xff]  }
  0xa1   :  { %1034 = vmatpush2.bf16.msra.mxu0 %v1932_v53  ;;  %1075 = vmatpush2.bf16.msra.mxu1 %v1935_v54  ;;  %v1980_v53 = vld [vmem:[#allocation7 + $0x48] sm:$0xff]  }
  0xa2   :  { %1035 = vmatprep.subr.bf16.mxu0 %v1940_v55  ;;  %1076 = vmatprep.subr.bf16.mxu1 %v1943_v56  ;;  %v1981_v54 = vld [vmem:[#allocation7 + $0x8] sm:$0xff]   ;;  %v1982_v55 = vld [vmem:[#allocation7 + $0x40] sm:$0xff]  }
  0xa3   :  { %v1983_v56 = vld [vmem:[#allocation7] sm:$0xff]  }
  0xa5   :  { %1036 = vmatpush2.bf16.msra.mxu0 %v1938_v57  ;;  %1077 = vmatpush2.bf16.msra.mxu1 %v1941_v58  ;;  %v1984_v57 = vld [vmem:[%s2276_s4 + $0x38] sm:$0xff]   ;;  %v2119_v58 = vmov 0.0  }
  0xa6   :  { %1037 = vmatprep.subr.bf16.mxu0 %v1946_v59  ;;  %1078 = vmatprep.subr.bf16.mxu1 %v1949_v60  ;;  %v1985_v59 = vld [vmem:[%s2276_s4 + $0x30] sm:$0xff]   ;;  %v1986_v60 = vld [vmem:[%s2276_s4 + $0x28] sm:$0xff]  }
  0xa9   :  { %1038 = vmatpush2.bf16.msra.mxu0 %v1944_v61  ;;  %1079 = vmatpush2.bf16.msra.mxu1 %v1947_v62  ;;  %v1987_v61 = vld [vmem:[%s2276_s4 + $0x20] sm:$0xff]   ;;  %v1988_v62 = vld [vmem:[%s2276_s4 + $0x18] sm:$0xff]  }
  0xaa   :  { %1039 = vmatprep.subr.bf16.mxu0 %v1952_v63  ;;  %1080 = vmatprep.subr.bf16.mxu1 %v1955_v0  ;;  %v681_v63 = vld [vmem:[%s2278_s6] sm:$0x3] }
  0xab   :  { %v686_v0 = vrot.slane %v681_v63, %v164_v12  ;;  %v1990_v12 = vld [vmem:[%s2276_s4 + $0x8] sm:$0xff]  }
  0xad   :  { %1040 = vmatpush2.bf16.msra.mxu0 %v1950_v1  ;;  %1081 = vmatpush2.bf16.msra.mxu1 %v1953_v2  ;;  %v690_v1 = vrot.slane %v681_v63, %v168_v15  ;;  %v1991_v15 = vld [vmem:[%s2276_s4] sm:$0xff]  }
  0xae   :  { %1041 = vmatprep.subr.bf16.mxu0 %v1958_v3  ;;  %1082 = vmatprep.subr.bf16.mxu1 %v1961_v4 }
  0xb1   :  { %1042 = vmatpush2.bf16.msra.mxu0 %v1956_v5  ;;  %1083 = vmatpush2.bf16.msra.mxu1 %v1959_v6 }
  0xb2   :  { %1043 = vmatprep.subr.bf16.mxu0 %v1964_v7  ;;  %1084 = vmatprep.subr.bf16.mxu1 %v1967_v8 }
  0xb5   :  { %1044 = vmatpush2.bf16.msra.mxu0 %v1962_v9  ;;  %1085 = vmatpush2.bf16.msra.mxu1 %v1965_v10 }
  0xb6   :  { %1682 = vmatprep.subr.bf16.mxu0 %v1968_v11  ;;  %1722 = vmatprep.subr.bf16.mxu1 %v2119_v58 }
 0x138   :  { %v561_v21 = vpop.f32.mrf.mxu0  ;;  %v602_v22 = vpop.f32.mrf.mxu1 }
 0x139   :  { %v562_v23 = vadd.f32 %v561_v21, %v165_v17  ;;  %v603_v24 = vadd.f32 %v602_v22, %v173_v18  ;;  %v1993_v21 = vld [vmem:[#allocation8 + $0x30] sm:$0xff]   ;;  %v1994_v22 = vld [vmem:[#allocation8 + $0x28] sm:$0xff]  }
 0x13a   :  { %v563_v25 = vpop.f32.mrf.mxu0  ;;  %v604_v26 = vpop.f32.mrf.mxu1 }
 0x13b   :  { %v611_v27 = vmax.f32 %v603_v24, 0.0  ;;  %v564_v28 = vadd.f32 %v563_v25, %v169_v19  ;;  %v605_v29 = vadd.f32 %v604_v26, %v177_v20  ;;  %v609_v30 = vmax.f32 %v562_v23, 0.0  ;;  %v1992_v20 = vld [vmem:[#allocation8 + $0x38] sm:$0xff]   ;;  %v1995_v23 = vld [vmem:[#allocation8 + $0x20] sm:$0xff]   ;;  %v1997_v25 = vld [vmem:[#allocation8 + $0x10] sm:$0xff]  }
 0x13c   :  { %v565_v31 = vpop.f32.mrf.mxu0  ;;  %v606_v32 = vpop.f32.mrf.mxu1  ;;  %v1996_v24 = vld [vmem:[#allocation8 + $0x18] sm:$0xff]  }
 0x13d   :  { %v610_v33 = vmax.f32 %v564_v28, 0.0  ;;  %v612_v34 = vmax.f32 %v605_v29, 0.0  ;;  %v615_v35 = vpack.c.bf16 %v611_v27, %v611_v27  ;;  %v613_v41 = vpack.c.bf16 %v609_v30, %v609_v30  ;;  %v1647_v27 = vld [vmem:[%s2279_s7] ss:$0 sm:$0xff] }
 0x13e   :  { %v566_v36 = vpop.f32.mrf.mxu0  ;;  %v607_v37 = vpop.f32.mrf.mxu1 }
 0x13f   :  { %v614_v38 = vpack.c.bf16 %v610_v33, %v610_v33  ;;  %v616_v39 = vpack.c.bf16 %v612_v34, %v612_v34  ;;  %v1999_v36 = vld [vmem:[#allocation8] sm:$0xff]  }
 0x140   :  { %v1664_v37 = vld [vmem:[%s2280_s8] ss:$0 sm:$0xff]  ;;  %s2080_s8 = scalar_lea.vmem %s1508_s9, 32 }
 0x141   :  { %1045 = vmatprep.mubr.bf16.mxu0 %v614_v38  ;;  %1086 = vmatprep.mubr.bf16.mxu1 %v616_v39  ;;  %p2081_p6 = scmp.ne.s32.totalorder %s1508_s9, %s2080_s8  ;;  %p2086_p8 = scmp.lt.s32.totalorder %s2080_s8, %s2080_s8 }
 0x142   :  { %1046 = vmatmul.mubr.bf16.vlgmr.msra.gmra.mxu0 %v613_v41  ;;  %1087 = vmatmul.mubr.bf16.vlgmr.msra.gmra.mxu1 %v615_v35  ;;  %v1998_v35 = vld [vmem:[#allocation8 + $0x8] sm:$0xff]  }
 0x143   :  { %1683 = vmatpush3.bf16.msra.mxu0 %v1969_v40  ;;  %1723 = vmatpush3.bf16.msra.mxu1 %v1984_v57  ;;  %p2087_p9 = por %p2086_p8, %p2085_p7 }
 0x144   :  { %1684 = vmatprep.subr.bf16.mxu0 %v1970_v42  ;;  %1724 = vmatprep.subr.bf16.mxu1 %v2119_v58 }
 0x145   :  { %1738 = vmatprep.mubr.msk.bf16.mxu1 %vm2120_vm0, %v2119_v58  ;;  %p2088_p10 = pnand %p2087_p9, %p2081_p6 }
 0x147   :  { %1685 = vmatpush3.bf16.msra.mxu0 %v1971_v43  ;;  %1725 = vmatpush3.bf16.msra.mxu1 %v1985_v59 }
 0x148   :  { %1686 = vmatprep.subr.bf16.mxu0 %v1972_v44  ;;  %1726 = vmatprep.subr.bf16.mxu1 %v2119_v58 }
 0x14b   :  { %1687 = vmatpush3.bf16.msra.mxu0 %v1973_v46  ;;  %1727 = vmatpush3.bf16.msra.mxu1 %v1986_v60  ;;  %v1673_v46 = vld [vmem:[%s2282_s10] ss:$0 sm:$0xff] }
 0x14c   :  { %1688 = vmatprep.subr.bf16.mxu0 %v1974_v47  ;;  %1728 = vmatprep.subr.bf16.mxu1 %v2119_v58 }
 0x14f   :  { %1689 = vmatpush3.bf16.msra.mxu0 %v1975_v48  ;;  %1729 = vmatpush3.bf16.msra.mxu1 %v1987_v61 }
 0x150   :  { %1690 = vmatprep.subr.bf16.mxu0 %v1976_v49  ;;  %1730 = vmatprep.subr.bf16.mxu1 %v2119_v58 }
 0x153   :  { %1691 = vmatpush3.bf16.msra.mxu0 %v1977_v50  ;;  %1731 = vmatpush3.bf16.msra.mxu1 %v1988_v62 }
 0x154   :  { %1692 = vmatprep.subr.bf16.mxu0 %v1978_v51  ;;  %1732 = vmatprep.subr.bf16.mxu1 %v2119_v58 }
 0x157   :  { %1693 = vmatpush3.bf16.msra.mxu0 %v1979_v52  ;;  %1733 = vmatpush3.bf16.msra.mxu1 %v1989_v45 }
 0x158   :  { %1694 = vmatprep.subr.bf16.mxu0 %v1980_v53  ;;  %1734 = vmatprep.subr.bf16.mxu1 %v2119_v58 }
 0x15b   :  { %1695 = vmatpush3.bf16.msra.mxu0 %v1981_v54  ;;  %1735 = vmatpush3.bf16.msra.mxu1 %v1990_v12 }
 0x15c   :  { %1696 = vmatprep.subr.bf16.mxu0 %v1982_v55  ;;  %1736 = vmatprep.subr.bf16.mxu1 %v2119_v58 }
 0x15f   :  { %1697 = vmatpush3.bf16.msra.mxu0 %v1983_v56  ;;  %1737 = vmatpush3.bf16.msra.mxu1 %v1991_v15 }
 0x160   :  { %1742 = vmatprep.subr.bf16.mxu0 %v2119_v58 }
 0x202   :  { %v1047_v2 = vpop.f32.mrf.mxu0  ;;  %v1088_v3 = vpop.f32.mrf.mxu1 }
 0x203   :  { %v1048_v4 = vadd.f32 %v1047_v2, %v686_v0 }
 0x204   :  { %v1049_v5 = vpop.f32.mrf.mxu0  ;;  %v1090_v6 = vpop.f32.mrf.mxu1 }
 0x205   :  { %v1089_v7 = vadd.f32 %v1088_v3, %v1048_v4  ;;  %v1050_v8 = vadd.f32 %v1049_v5, %v690_v1 }
 0x206   :  { %v1051_v9 = vpop.f32.mrf.mxu0  ;;  %v1092_v10 = vpop.f32.mrf.mxu1 }
 0x207   :  { %v1091_v11 = vadd.f32 %v1090_v6, %v1050_v8  ;;  %v1095_v13 = vmax.f32 %v1089_v7, 0.0 }
 0x208   :  { %v1052_v14 = vpop.f32.mrf.mxu0  ;;  %v1093_v16 = vpop.f32.mrf.mxu1 }
 0x209   :  { %v1096_v17 = vmax.f32 %v1091_v11, 0.0  ;;  %v1097_v19 = vpack.c.bf16 %v1095_v13, %v1095_v13 }
 0x20b   :  { %v1098_v18 = vpack.c.bf16 %v1096_v17, %v1096_v17 }
 0x20d   :  { %1266 = vmatprep.mubr.bf16.mxu0 %v1098_v18 }
 0x20e   :  { %1267 = vmatmul.mubr.bf16.vlgmr.msra.gmra.mxu0 %v1097_v19 }
 0x20f   :  { %1758 = vmatprep.mubr.msk.bf16.mxu0 %vm2120_vm0, %v2119_v58  ;;  %1743 = vmatpush3.bf16.msra.mxu0 %v1992_v20 }
 0x210   :  { %1744 = vmatprep.subr.bf16.mxu0 %v2119_v58 }
 0x213   :  { %1745 = vmatpush3.bf16.msra.mxu0 %v1993_v21 }
 0x214   :  { %1746 = vmatprep.subr.bf16.mxu0 %v2119_v58 }
 0x217   :  { %1747 = vmatpush3.bf16.msra.mxu0 %v1994_v22 }
 0x218   :  { %1748 = vmatprep.subr.bf16.mxu0 %v2119_v58 }
 0x21b   :  { %1749 = vmatpush3.bf16.msra.mxu0 %v1995_v23 }
 0x21c   :  { %1750 = vmatprep.subr.bf16.mxu0 %v2119_v58 }
 0x21f   :  { %1751 = vmatpush3.bf16.msra.mxu0 %v1996_v24 }
 0x220   :  { %1752 = vmatprep.subr.bf16.mxu0 %v2119_v58 }
 0x223   :  { %1753 = vmatpush3.bf16.msra.mxu0 %v1997_v25 }
 0x224   :  { %1754 = vmatprep.subr.bf16.mxu0 %v2119_v58 }
 0x227   :  { %1755 = vmatpush3.bf16.msra.mxu0 %v1998_v35 }
 0x228   :  { %1756 = vmatprep.subr.bf16.mxu0 %v2119_v58 }
 0x22b   :  { %1757 = vmatpush3.bf16.msra.mxu0 %v1999_v36 }
 0x2ce   :  { %v1698_v26 = vpop.f32.mrf.mxu0 }
 0x2d0   :  { %v1699_v28 = vpop.f32.mrf.mxu0 }
 0x2d1   :  { %v1700_v29 = vadd.f32 %v1699_v28, %v1698_v26 }
 0x2d2   :  { %v1701_v30 = vpop.f32.mrf.mxu0 }
 0x2d3   :  { %v1269_v31 = vadd.f32 %v1700_v29, %v1647_v27 }
 0x2d4   :  { %v1702_v32 = vpop.f32.mrf.mxu0 }
 0x2d5   :  { %v1274_v33 = vmax.f32 %v1269_v31, 0.0 }
 0x2d7   :  { %v1275_v34 = vpack.c.bf16 %v1274_v33, %v1274_v33 }
 0x2d9   :  { %1739 = vmatmul.mubr.bf16.vlgmr.msra.gmra.mxu1 %v1275_v34 }
 0x399   :  { %v1381_v38 = vpop.f32.mrf.mxu1 }
 0x39a   :  { %v1382_v39 = vadd.f32 %v1664_v37, %v1381_v38 }
 0x39b   :  { %v1740_v40 = vpop.f32.mrf.mxu1 }
 0x39c   :  { %v1387_v41 = vmax.f32 %v1382_v39, 0.0 }
 0x39d   :  { %v1384_v42 = vpop.f32.mrf.mxu1 }
 0x39e   :  { %v1388_v43 = vpack.c.bf16 %v1387_v41, %v1387_v41 }
 0x39f   :  { %v1741_v44 = vpop.f32.mrf.mxu1 }
 0x3a0   :  { %1759 = vmatmul.mubr.bf16.vlgmr.msra.gmra.mxu0 %v1388_v43 }
 0x460   :  { %v1494_v47 = vpop.f32.mrf.mxu0 }
 0x461   :  { %v1495_v48 = vadd.f32 %v1673_v46, %v1494_v47 }
 0x462   :  { %v1760_v49 = vpop.f32.mrf.mxu0 }
 0x463   :  { %1500 = vst [vmem:[#allocation10] sm:$0x3] %v1495_v48 }
 0x464   :  { %v1497_v50 = vpop.f32.mrf.mxu0 }
 0x465   :  { %2091 = shalt.err (!%p2088_p10)
}
 0x466   :  { %1510 = dma.vmem_to_hbm [thread:$0]  %s1508_s9, 32, %s2283_s11, [#allocation4]   ;;  %v1761_v51 = vpop.f32.mrf.mxu0 }
 0x467   :  { %2106 = dma.done.wait [#allocation4], 32  }
 0x468   :  { %2107 = vsyncadd [#allocation4], 4294967264 }
 0x469   :  { %1514 = vsyncpa [#allocation3], 1 }
 0x46a   :  { %1515 = vsyncpa [#allocation6], 1 }
 0x46b   :  { %1516 = vsyncpa [#allocation9], 1 }
 0x46c   :  { %1517 = vsyncpa [#allocation4], 1 }

</bundles_post_ra>
